<compile_context>
chip_gen: v7x
topology: tpu7x:2x2x1
jax: 0.10.0
libtpu: 0.0.40
codegen_flags: <defaults>
</compile_context>

<pallas_src>
import functools

import jax
import jax.numpy as jnp
from jax import lax
from jax.experimental import pallas as pl
from jax.experimental.pallas import tpu as pltpu

_LANE = 128          # TPU lane width: feature axes kept multiples of this
_DEFAULT_TM = 512    # requested row tile; the planner shrinks it to fit VMEM / grid


# ----------------------------------------------------------------------------
# Helpers
# ----------------------------------------------------------------------------
def _round_up(n, m):
    return ((n + m - 1) // m) * m


def _pad2d(a, rows, cols):
    r, c = a.shape
    if (r, c) == (rows, cols):
        return a
    return jnp.pad(a, ((0, rows - r), (0, cols - c)))


def _vmem_budget_bytes():
    """Generation-aware VMEM budget with headroom for compiler scratch."""
    cap = 64 * 1024 * 1024            # conservative default (v7x physical VMEM)
    try:
        cap = int(pltpu.get_tpu_info().vmem_capacity_bytes)
    except Exception:                 # capability probe only; default is safe
        pass
    return max(16 * 1024 * 1024, min(int(cap * 0.8), cap - 12 * 1024 * 1024))


@functools.lru_cache(maxsize=None)
def _supports_single_buffering():
    """Probe once whether this jax/Mosaic accepts pipeline_mode=pl.Buffered(1)."""
    def _probe_kernel(x_ref, c_ref, o_ref):
        o_ref[...] = x_ref[...] + c_ref[...]

    try:
        f = pl.pallas_call(
            _probe_kernel,
            out_shape=jax.ShapeDtypeStruct((16, _LANE), jnp.float32),
            grid=(2,),
            in_specs=[pl.BlockSpec((8, _LANE), lambda i: (i, 0)),
                      pl.BlockSpec((8, _LANE), lambda i: (0, 0),
                                   pipeline_mode=pl.Buffered(1))],
            out_specs=pl.BlockSpec((8, _LANE), lambda i: (i, 0)),
        )
        jax.jit(f).lower(jnp.zeros((16, _LANE), jnp.float32),
                         jnp.zeros((16, _LANE), jnp.float32)).compile()
        return True
    except Exception:
        return False


def _layernorm_rows(y, g, b, d_true):
    """Row-wise LayerNorm (eps=1e-5) over the first `d_true` lanes of y [tm, dp]."""
    d_pad = y.shape[-1]
    if d_pad == d_true:
        mean = jnp.mean(y, axis=-1, keepdims=True)
        yc = y - mean
        var = jnp.mean(yc * yc, axis=-1, keepdims=True)       # biased, like torch
    else:
        # Lane-padded path: padded lanes hold zeros; mask them out of the stats.
        lane = lax.broadcasted_iota(jnp.int32, (1, d_pad), 1)
        mask = (lane < d_true).astype(jnp.float32)
        mean = jnp.sum(y * mask, axis=-1, keepdims=True) / d_true
        yc = y - mean
        var = jnp.sum(yc * yc * mask, axis=-1, keepdims=True) / d_true
    inv = lax.rsqrt(var + 1e-5)      # EUP slot -> effectively free next to MXU work
    return yc * inv * g + b


# ----------------------------------------------------------------------------
# Kernels
# ----------------------------------------------------------------------------
def _layer_step(x_ref, enc_ref, w1_ref, w2_ref, wc_ref, acc_ref):
    """One F-chunk of: acc = x + enc@Wc + relu(x@W1)@W2, f32 accumulation.

    Activations are cast to the weight dtype (bf16 by default) so the MXU runs
    its native bf16 path; accumulation stays f32 via preferred_element_type.
    """
    f = pl.program_id(1)

    @pl.when(f == 0)
    def _():
        cr = jnp.dot(enc_ref[...].astype(wc_ref.dtype), wc_ref[...],
                     preferred_element_type=jnp.float32)
        acc_ref[...] = x_ref[...].astype(jnp.float32) + cr

    h = jnp.dot(x_ref[...].astype(w1_ref.dtype), w1_ref[...],
                preferred_element_type=jnp.float32)
    h = jnp.maximum(h, 0.0)
    acc_ref[...] += jnp.dot(h.astype(w2_ref.dtype), w2_ref[...],
                            preferred_element_type=jnp.float32)


def _decoder_layer_kernel(x_ref, enc_ref, w1_ref, w2_ref, wc_ref, o_ref, acc_ref):
    _layer_step(x_ref, enc_ref, w1_ref, w2_ref, wc_ref, acc_ref)

    @pl.when(pl.program_id(1) == pl.num_programs(1) - 1)
    def _():
        o_ref[...] = acc_ref[...].astype(o_ref.dtype)


def _decoder_layer_ln_kernel(x_ref, enc_ref, w1_ref, w2_ref, wc_ref, g_ref, b_ref,
                             o_ref, acc_ref, *, d_true):
    """Last decoder layer with the Decoder's final LayerNorm fused as epilogue."""
    _layer_step(x_ref, enc_ref, w1_ref, w2_ref, wc_ref, acc_ref)

    @pl.when(pl.program_id(1) == pl.num_programs(1) - 1)
    def _():
        y = _layernorm_rows(acc_ref[...], g_ref[...].astype(jnp.float32),
                            b_ref[...].astype(jnp.float32), d_true)
        o_ref[...] = y.astype(o_ref.dtype)


def _layernorm_kernel(x_ref, g_ref, b_ref, o_ref, *, d_true):
    """Standalone LayerNorm (only used when the Decoder has zero layers)."""
    y = _layernorm_rows(x_ref[...].astype(jnp.float32),
                        g_ref[...].astype(jnp.float32),
                        b_ref[...].astype(jnp.float32), d_true)
    o_ref[...] = y.astype(o_ref.dtype)


# ----------------------------------------------------------------------------
# Tile planning (generation aware)
# ----------------------------------------------------------------------------
def _plan_tiles(n, d_true, f_true, act_bytes, w_bytes, tm_req, budget):
    """Pick (tm, dp, tf, fpad) so double-buffered tiles fit the VMEM budget."""
    dp = _round_up(d_true, _LANE)

    # Row tile: multiple of 8, capped by the request; keep >= 4 row-grid steps
    # when n allows so both v7x TensorCores get work and the pipeline has depth.
    tm = max(8, min(_round_up(tm_req, 8), _round_up(n, 8)))
    if n >= 32:
        tm = min(tm, max(8, (n // 4) // 8 * 8))

    def fixed(tm_):
        return (6 * tm_ * dp * act_bytes      # x, enc, out (double-buffered)
                + tm_ * dp * 4                # f32 accumulator scratch
                + 2 * dp * dp * w_bytes       # Wc (worst case: double-buffered)
                + 4 * dp * w_bytes)           # gamma + beta

    def per_f_col(tm_):
        # double-buffered W1 column + W2 row + the f32 [tm, tf] hidden intermediate
        return 4 * dp * w_bytes + 4 * tm_

    # Shrink tm until at least one 128-wide W1/W2 tile pair fits next to the
    # non-streamed operands.
    while tm > 8 and fixed(tm) + _LANE * per_f_col(tm) > budget:
        tm = max(8, (tm // 2) // 8 * 8)
    # TODO(synk): if Wc alone (dp*dp) still exceeds the budget for very large D,
    # stream the D contraction of Wc over an additional grid axis as well.

    avail = max(0, budget - fixed(tm))
    fp0 = _round_up(max(f_true, _LANE), _LANE)
    tf_max = max(_LANE, (avail // per_f_col(tm)) // _LANE * _LANE)
    nf = -(-fp0 // tf_max)                       # ceil: number of F chunks
    tf = _round_up(-(-fp0 // nf), _LANE)         # chunk size, lane aligned
    fpad = nf * tf
    return tm, dp, tf, fpad


# ----------------------------------------------------------------------------
# pallas_call wrappers
# ----------------------------------------------------------------------------
def decoder_layer_pallas(x2d, enc2d, w1, w2, wc, gamma2d, beta2d, *, d_true, tm, tf,
                         fuse_ln, vmem_limit_bytes):
    n, dp = x2d.shape
    fp = w1.shape[1]
    assert n % tm == 0 and dp % _LANE == 0 and fp % tf == 0

    single = _supports_single_buffering()

    def const_spec(shape):
        # Constant index_map -> the block never changes across the grid; single
        # buffering avoids a redundant second VMEM copy (probed, not guessed).
        idx = lambda i, f: (0,) * len(shape)
        if single:
            return pl.BlockSpec(shape, idx, pipeline_mode=pl.Buffered(1))
        return pl.BlockSpec(shape, idx)

    row_spec = pl.BlockSpec((tm, dp), lambda i, f: (i, 0))
    in_specs = [row_spec, row_spec,
                pl.BlockSpec((dp, tf), lambda i, f: (0, f)),   # W1 streamed over F
                pl.BlockSpec((tf, dp), lambda i, f: (f, 0)),   # W2 streamed over F
                const_spec((dp, dp))]                          # Wc
    args = [x2d, enc2d, w1, w2, wc]
    if fuse_ln:
        in_specs += [const_spec((1, dp)), const_spec((1, dp))]
        args += [gamma2d, beta2d]
        kernel = functools.partial(_decoder_layer_ln_kernel, d_true=d_true)
    else:
        kernel = _decoder_layer_kernel

    return pl.pallas_call(
        kernel,
        out_shape=jax.ShapeDtypeStruct((n, dp), x2d.dtype),
        grid_spec=pltpu.PrefetchScalarGridSpec(
            num_scalar_prefetch=0,
            grid=(n // tm, fp // tf),
            in_specs=in_specs,
            out_specs=row_spec,
            scratch_shapes=[pltpu.VMEM((tm, dp), jnp.float32)],
        ),
        input_output_aliases={0: 0},   # update x in place across the layer loop
        compiler_params=pltpu.CompilerParams(
            dimension_semantics=("parallel", "arbitrary"),
            vmem_limit_bytes=vmem_limit_bytes,
        ),
    )(*args)


def layernorm_pallas(x2d, gamma2d, beta2d, *, d_true, tm, vmem_limit_bytes):
    n, dp = x2d.shape
    assert n % tm == 0 and dp % _LANE == 0
    single = _supports_single_buffering()

    def const_spec(shape):
        idx = lambda i: (0,) * len(shape)
        if single:
            return pl.BlockSpec(shape, idx, pipeline_mode=pl.Buffered(1))
        return pl.BlockSpec(shape, idx)

    return pl.pallas_call(
        functools.partial(_layernorm_kernel, d_true=d_true),
        out_shape=jax.ShapeDtypeStruct((n, dp), x2d.dtype),
        grid_spec=pltpu.PrefetchScalarGridSpec(
            num_scalar_prefetch=0,
            grid=(n // tm,),
            in_specs=[pl.BlockSpec((tm, dp), lambda i: (i, 0)),
                      const_spec((1, dp)), const_spec((1, dp))],
            out_specs=pl.BlockSpec((tm, dp), lambda i: (i, 0)),
        ),
        input_output_aliases={0: 0},
        compiler_params=pltpu.CompilerParams(
            dimension_semantics=("parallel",),
            vmem_limit_bytes=vmem_limit_bytes,
        ),
    )(x2d, gamma2d, beta2d)


# ----------------------------------------------------------------------------
# Decoder.forward
# ----------------------------------------------------------------------------
def decoder_forward(x, encoder_output, src_mask, tgt_mask, layer_params, gamma, beta,
                    *, tm=_DEFAULT_TM, mxu_dtype=jnp.bfloat16):
    """x, encoder_output: [B, S, D]  ->  [B, S, D]  (Decoder.forward).

    mxu_dtype: dtype fed to the MXU (bf16 default, f32 for bit-exactness).
    """
    # TODO(synk): src_mask / tgt_mask are consumed inside the opaque injected
    # decoder layers (self/cross attention) of the original model; Decoder itself
    # only forwards them, and the synthetic residual blocks here do not use them.
    del src_mask, tgt_mask
    b, s, d = x.shape
    n = b * s
    act_bytes = jnp.dtype(x.dtype).itemsize
    budget = _vmem_budget_bytes()

    if not layer_params:
        dp = _round_up(d, _LANE)
        tm_eff = max(8, min(_round_up(tm, 8), _round_up(n, 8)))
        if n >= 32:
            tm_eff = min(tm_eff, max(8, (n // 4) // 8 * 8))
        npad = _round_up(n, tm_eff)
        x2d = _pad2d(x.reshape(n, d), npad, dp)
        g2 = _pad2d(gamma.reshape(1, d), 1, dp)
        b2 = _pad2d(beta.reshape(1, d), 1, dp)
        y2d = layernorm_pallas(x2d, g2, b2, d_true=d, tm=tm_eff,
                               vmem_limit_bytes=budget)
        return y2d[:n, :d].reshape(b, s, d)

    f_true = max(w1.shape[1] for (w1, _, _) in layer_params)
    w_bytes = jnp.dtype(mxu_dtype).itemsize
    tm_eff, dp, tf, fpad = _plan_tiles(n, d, f_true, act_bytes, w_bytes, tm, budget)
    npad = _round_up(n, tm_eff)

    x2d = _pad2d(x.reshape(n, d), npad, dp)
    enc2d = _pad2d(encoder_output.reshape(n, d), npad, dp)
    g2 = _pad2d(gamma.reshape(1, d), 1, dp)
    b2 = _pad2d(beta.reshape(1, d), 1, dp)

    # Pre-cast weights to the MXU dtype (halves weight DMA bytes for bf16) and
    # pad to lane-dense, chunk-aligned shapes.
    padded_params = []
    for (w1, w2, wc) in layer_params:
        padded_params.append((_pad2d(w1, dp, fpad).astype(mxu_dtype),
                              _pad2d(w2, fpad, dp).astype(mxu_dtype),
                              _pad2d(wc, dp, dp).astype(mxu_dtype)))

    # TODO(synk): when B*S is large relative to the weights, stack per-layer
    # weights along an extra 'arbitrary' layer grid axis (keeping the x/enc row
    # tile VMEM-resident across layers), and/or prefetch layer l+1's weights
    # during layer l via a cross-pallas_call semaphore future.
    # TODO(synk): optional fp8 weight path for v7x inference (fp8 MXU inputs).
    y2d = x2d
    for li, (w1p, w2p, wcp) in enumerate(padded_params):
        y2d = decoder_layer_pallas(
            y2d, enc2d, w1p, w2p, wcp, g2, b2, d_true=d, tm=tm_eff, tf=tf,
            fuse_ln=(li == len(padded_params) - 1), vmem_limit_bytes=budget)

    return y2d[:n, :d].reshape(b, s, d)


# ----------------------------------------------------------------------------
# Pure-JAX reference (matches the kernel's bf16-input / f32-accumulate math)
# ----------------------------------------------------------------------------
def _reference(x, encoder_output, layer_params, gamma, beta, mxu_dtype=jnp.bfloat16):
    b, s, d = x.shape
    y = x.reshape(b * s, d).astype(jnp.float32)
    e = encoder_output.reshape(b * s, d).astype(jnp.float32)
    for (w1, w2, wc) in layer_params:
        w1c, w2c, wcc = (w1.astype(mxu_dtype), w2.astype(mxu_dtype),
                         wc.astype(mxu_dtype))
        h = jnp.maximum(jnp.dot(y.astype(mxu_dtype), w1c,
                                preferred_element_type=jnp.float32), 0.0)
        ff = jnp.dot(h.astype(mxu_dtype), w2c, preferred_element_type=jnp.float32)
        cr = jnp.dot(e.astype(mxu_dtype), wcc, preferred_element_type=jnp.float32)
        y = y + ff + cr
    mean = jnp.mean(y, axis=-1, keepdims=True)
    var = jnp.mean((y - mean) ** 2, axis=-1, keepdims=True)
    y = (y - mean) * lax.rsqrt(var + 1e-5) * gamma + beta
    return y.reshape(b, s, d).astype(x.dtype)


# ----------------------------------------------------------------------------
# Demo
# ----------------------------------------------------------------------------
if __name__ == "__main__":
    key = jax.random.PRNGKey(0)
    B, S, D, F, N_LAYERS = 2, 64, 128, 256, 2

    keys = jax.random.split(key, 2 + 3 * N_LAYERS)
    x = jax.random.normal(keys[0], (B, S, D), jnp.float32)
    enc = jax.random.normal(keys[1], (B, S, D), jnp.float32)
    src_mask = jnp.ones((B, 1, S, S), jnp.float32)
    tgt_mask = jnp.tril(jnp.ones((S, S), jnp.float32))[None, None]

    # Deterministic synthetic per-layer parameters.
    layer_params = []
    for l in range(N_LAYERS):
        k1, k2, k3 = keys[2 + 3 * l: 5 + 3 * l]
        layer_params.append((
            jax.random.normal(k1, (D, F), jnp.float32) * 0.05,
            jax.random.normal(k2, (F, D), jnp.float32) * 0.05,
            jax.random.normal(k3, (D, D), jnp.float32) * 0.05,
        ))
    gamma = jnp.ones((D,), jnp.float32)   # torch.nn.LayerNorm init
    beta = jnp.zeros((D,), jnp.float32)

    out = decoder_forward(x, enc, src_mask, tgt_mask, layer_params, gamma, beta)
    out = jax.block_until_ready(out)
    assert out.shape == (B, S, D)

    ref = _reference(x, enc, layer_params, gamma, beta)
    max_err = float(jnp.max(jnp.abs(out - ref)))
    assert jnp.allclose(out, ref, atol=2e-2, rtol=2e-2), max_err

    print("KERNEL_OK")
</pallas_src>

<mosaic_0001>
module attributes {stable_mosaic.version = 11 : i64} {
  func.func @_decoder_layer_kernel(%arg0: i32, %arg1: i32, %arg2: memref<32x128xf32, #tpu.memory_space<vmem>>, %arg3: memref<32x128xf32, #tpu.memory_space<vmem>>, %arg4: memref<128x256xbf16, #tpu.memory_space<vmem>>, %arg5: memref<256x128xbf16, #tpu.memory_space<vmem>>, %arg6: memref<128x128xbf16, #tpu.memory_space<vmem>>, %arg7: memref<32x128xf32, #tpu.memory_space<vmem>>, %arg8: memref<32x128xf32, #tpu.memory_space<vmem>>) attributes {dimension_semantics = [#tpu.dimension_semantics<parallel>, #tpu.dimension_semantics<arbitrary>], iteration_bounds = array<i64: 4, 1>, scalar_prefetch = 0 : i64, scratch_operands = 1 : i64, tpu.core_type = #tpu.core_type<tc>, window_params = [{transform_indices = @transform_0, window_bounds = array<i64: 32, 128>}, {transform_indices = @transform_1, window_bounds = array<i64: 32, 128>}, {transform_indices = @transform_2, window_bounds = array<i64: 128, 256>}, {transform_indices = @transform_3, window_bounds = array<i64: 256, 128>}, {pipeline_mode = #tpu.pipeline_mode<synchronous>, transform_indices = @transform_4, window_bounds = array<i64: 128, 128>}, {transform_indices = @transform_5, window_bounds = array<i64: 32, 128>}]} {
    %c0_i32 = arith.constant 0 : i32
    %0 = arith.cmpi eq, %arg1, %c0_i32 : i32
    %1 = arith.extui %0 : i1 to i32
    %c0_i32_0 = arith.constant 0 : i32
    %2 = arith.cmpi ne, %1, %c0_i32_0 : i32
    scf.if %2 {
      %c0_14 = arith.constant 0 : index
      %c0_15 = arith.constant 0 : index
      %18 = vector.load %arg3[%c0_14, %c0_15] : memref<32x128xf32, #tpu.memory_space<vmem>>, vector<32x128xf32>
      %19 = arith.truncf %18 : vector<32x128xf32> to vector<32x128xbf16>
      %c0_16 = arith.constant 0 : index
      %c0_17 = arith.constant 0 : index
      %20 = vector.load %arg6[%c0_16, %c0_17] : memref<128x128xbf16, #tpu.memory_space<vmem>>, vector<128x128xbf16>
      %cst_18 = arith.constant dense<0.000000e+00> : vector<32x128xf32>
      %21 = tpu.matmul %19, %20, %cst_18 {dimension_numbers = #tpu.dot_dimension_numbers<[1], [0], [0], [1], [0, 0, 1, 1], [], []>} : vector<32x128xbf16>, vector<128x128xbf16>, vector<32x128xf32> -> vector<32x128xf32>
      %c0_19 = arith.constant 0 : index
      %c0_20 = arith.constant 0 : index
      %22 = vector.load %arg2[%c0_19, %c0_20] : memref<32x128xf32, #tpu.memory_space<vmem>>, vector<32x128xf32>
      %23 = arith.addf %22, %21 : vector<32x128xf32>
      %c0_21 = arith.constant 0 : index
      %c0_22 = arith.constant 0 : index
      %24 = vector.load %arg8[%c0_21, %c0_22] : memref<32x128xf32, #tpu.memory_space<vmem>>, vector<32x128xf32>
      tpu.vector_store %arg8[%c0_21, %c0_22], %23 {strides = array<i32>} : memref<32x128xf32, #tpu.memory_space<vmem>>, vector<32x128xf32>,
    } else {
    }
    %c0 = arith.constant 0 : index
    %c0_1 = arith.constant 0 : index
    %3 = vector.load %arg2[%c0, %c0_1] : memref<32x128xf32, #tpu.memory_space<vmem>>, vector<32x128xf32>
    %4 = arith.truncf %3 : vector<32x128xf32> to vector<32x128xbf16>
    %c0_2 = arith.constant 0 : index
    %c0_3 = arith.constant 0 : index
    %5 = vector.load %arg4[%c0_2, %c0_3] : memref<128x256xbf16, #tpu.memory_space<vmem>>, vector<128x256xbf16>
    %cst = arith.constant dense<0.000000e+00> : vector<32x256xf32>
    %6 = tpu.matmul %4, %5, %cst {dimension_numbers = #tpu.dot_dimension_numbers<[1], [0], [0], [1], [0, 0, 1, 1], [], []>} : vector<32x128xbf16>, vector<128x256xbf16>, vector<32x256xf32> -> vector<32x256xf32>
    %cst_4 = arith.constant 0.000000e+00 : f32
    %7 = vector.broadcast %cst_4 : f32 to vector<32x256xf32>
    %8 = arith.maximumf %6, %7 : vector<32x256xf32>
    %c0_5 = arith.constant 0 : index
    %c0_6 = arith.constant 0 : index
    %9 = vector.load %arg8[%c0_5, %c0_6] : memref<32x128xf32, #tpu.memory_space<vmem>>, vector<32x128xf32>
    %10 = arith.truncf %8 : vector<32x256xf32> to vector<32x256xbf16>
    %c0_7 = arith.constant 0 : index
    %c0_8 = arith.constant 0 : index
    %11 = vector.load %arg5[%c0_7, %c0_8] : memref<256x128xbf16, #tpu.memory_space<vmem>>, vector<256x128xbf16>
    %cst_9 = arith.constant dense<0.000000e+00> : vector<32x128xf32>
    %12 = tpu.matmul %10, %11, %cst_9 {dimension_numbers = #tpu.dot_dimension_numbers<[1], [0], [0], [1], [0, 0, 1, 1], [], []>} : vector<32x256xbf16>, vector<256x128xbf16>, vector<32x128xf32> -> vector<32x128xf32>
    %13 = arith.addf %9, %12 : vector<32x128xf32>
    %c0_10 = arith.constant 0 : index
    %c0_11 = arith.constant 0 : index
    %14 = vector.load %arg8[%c0_10, %c0_11] : memref<32x128xf32, #tpu.memory_space<vmem>>, vector<32x128xf32>
    tpu.vector_store %arg8[%c0_10, %c0_11], %13 {strides = array<i32>} : memref<32x128xf32, #tpu.memory_space<vmem>>, vector<32x128xf32>,
    %c0_i32_12 = arith.constant 0 : i32
    %15 = arith.cmpi eq, %arg1, %c0_i32_12 : i32
    %16 = arith.extui %15 : i1 to i32
    %c0_i32_13 = arith.constant 0 : i32
    %17 = arith.cmpi ne, %16, %c0_i32_13 : i32
    scf.if %17 {
      %c0_14 = arith.constant 0 : index
      %c0_15 = arith.constant 0 : index
      %18 = vector.load %arg8[%c0_14, %c0_15] : memref<32x128xf32, #tpu.memory_space<vmem>>, vector<32x128xf32>
      %c0_16 = arith.constant 0 : index
      %c0_17 = arith.constant 0 : index
      %19 = vector.load %arg7[%c0_16, %c0_17] : memref<32x128xf32, #tpu.memory_space<vmem>>, vector<32x128xf32>
      tpu.vector_store %arg7[%c0_16, %c0_17], %18 {strides = array<i32>} : memref<32x128xf32, #tpu.memory_space<vmem>>, vector<32x128xf32>,
    } else {
    }
    return
  }
  func.func @transform_0(%arg0: i32, %arg1: i32) -> (i32, i32) {
    %c0_i32 = arith.constant 0 : i32
    %c0_i32_0 = arith.constant 0 : i32
    return %arg0, %c0_i32 : i32, i32
  }
  func.func @transform_1(%arg0: i32, %arg1: i32) -> (i32, i32) {
    %c0_i32 = arith.constant 0 : i32
    %c0_i32_0 = arith.constant 0 : i32
    return %arg0, %c0_i32 : i32, i32
  }
  func.func @transform_2(%arg0: i32, %arg1: i32) -> (i32, i32) {
    %c0_i32 = arith.constant 0 : i32
    %c0_i32_0 = arith.constant 0 : i32
    return %c0_i32, %arg1 : i32, i32
  }
  func.func @transform_3(%arg0: i32, %arg1: i32) -> (i32, i32) {
    %c0_i32 = arith.constant 0 : i32
    %c0_i32_0 = arith.constant 0 : i32
    return %arg1, %c0_i32 : i32, i32
  }
  func.func @transform_4(%arg0: i32, %arg1: i32) -> (i32, i32) {
    %c0_i32 = arith.constant 0 : i32
    %c0_i32_0 = arith.constant 0 : i32
    %c0_i32_1 = arith.constant 0 : i32
    return %c0_i32, %c0_i32_0 : i32, i32
  }
  func.func @transform_5(%arg0: i32, %arg1: i32) -> (i32, i32) {
    %c0_i32 = arith.constant 0 : i32
    %c0_i32_0 = arith.constant 0 : i32
    return %arg0, %c0_i32 : i32, i32
  }
}

</mosaic_0001>

<bundles_post_ra>
// kernel: tpu_custom_call.1
= control target key start
LH: loop header
LB: loop body
LE: loop exit
PB: predicated region body
PF: predicated region fallthrough
CT: control target
= control target key end

     0   :  { %10 = vsyncpa [#allocation4], 0  ;;  %s1808_s0 = inlined_call_operand.hbm [shape: f32[128,128], index: 0, kind: input, shape index: {}, may-alias: {0,5}]   ;;  %s1809_s1 = inlined_call_operand.vmem [shape: f32[128,128], index: 1, kind: input, shape index: {}]   ;;  %s1810_s2 = inlined_call_operand.vmem [shape: bf16[128,256], index: 2, kind: input, shape index: {}]   ;;  %s1811_s3 = inlined_call_operand.hbm [shape: bf16[256,128], index: 3, kind: input, shape index: {}]   ;;  %s1812_s4 = inlined_call_operand.hbm [shape: bf16[128,128], index: 4, kind: input, shape index: {}]   ;;  %s1813_s5 = inlined_call_operand.hbm [shape: f32[128,128], index: 5, kind: output, shape index: {}, may-alias: {0,5}]  }
   0x1   :  { %12 = vsyncpa [#allocation4 + $0x1], 0 }
   0x2   :  { %13 = vsyncpa [#allocation7], 0 }
   0x3   :  { %14 = vsyncpa [#allocation5], 0 }
   0x4   :  { %16 = vsyncpa [#allocation5 + $0x1], 0  ;;  %s1476_s18 = smov 0   ;;  %s1478_s19 = smov 0  }
   0x5   :  { %s1480_s20 = smov 0   ;;  %s1482_s21 = smov 0  }
   0x6   :  { %s1484_s22 = smov 0   ;;  %s1486_s23 = smov 0  }
   0x7 LB: > { %s985_s24 = sadd.s32 4294967295, %s1433_s23   ;;  %s986_s25 = sadd.s32 4294967294, %s1433_s23   ;;  %s1433_s23 = sphi %s1486_s23, %s22_s23   ;;  %s1429_s22 = sphi %s1484_s22, %s1835_s22   ;;  %s1425_s21 = sphi %s1482_s21, %s1834_s21   ;;  %s1421_s20 = sphi %s1480_s20, %s1833_s20   ;;  %s1417_s19 = sphi %s1478_s19, %s1832_s19   ;;  %s1413_s18 = sphi %s1476_s18, %s1831_s18  }
   0x8   : > { %p54_p0 = scmp.ne.s32.totalorder %s1417_s19, %s1413_s18  ;;  %p1510_p1 = scmp.eq.s32.totalorder %s985_s24, 0 }
   0x9   : > { %p1514_p2 = scmp.eq.s32.totalorder %s985_s24, 3  ;;  %p183_p3 = scmp.eq.s32.totalorder %s986_s25, 3 }
   0xa   : > { %s1818_s26 = scalar_select %p1510_p1, 1, 0 }
   0xb   : > { %s1819_s27 = scalar_select %p1514_p2, 1, 0 }
   0xc   : > { %p1520_p4 = por %p1510_p1, %p54_p0  ;;  %p987_p5 = scmp.ge.s32.totalorder %s1433_s23, 1 }
   0xd   : > { %p1525_p6 = por %p183_p3, %p54_p0  ;;  %p190_p7 = scmp.lt.s32.totalorder %s1433_s23, 5 }
   0xe   : > { %s1820_s28 = scalar_select %p1520_p4, 1, 0 }
   0xf   : > { %s1821_s29 = scalar_select %p1525_p6, 1, 0 }
  0x10   : > { %p1530_p8 = pnand %p987_p5, %p190_p7  ;;  %s1435_s6 = smov [#allocation6]  }
  0x11   : > { %s214_s7 = sshll.u32 %s1435_s6, 4  ;;  %s1436_s9 = smov [#allocation8]   ;;  %s215_s7 = int_to_ptr.vmem [resolvable:$true] %s214_s7 }
  0x12   : > { %s1822_s30 = scalar_select %p1530_p8, 1, 0 }
  0x13   : > { %p1135_p9 = pneg %p1530_p8  ;;  %s227_s10 = sshll.u32 %s1436_s9, 4  ;;  %s1542_s10 = int_to_ptr.vmem [resolvable:$true] %s227_s10 }
  0x14   : > { %s1261_s13 = scalar_lea.hbm %s1811_s3, 2048 }
  0x15   : > { %p1538_p10 = pnand %p1135_p9, %p1510_p1  ;;  %p1262_p11 = scmp.ne.s32.totalorder %s1811_s3, %s1261_s13 }
  0x16   : > { %p1268_p3 = scmp.lt.u32.totalorder %s1261_s13, %s1811_s3 }
  0x17   : > { %p1263_p12 = pneg %p1538_p10 }
  0x19   : > { %p1264_p13 = pnand %p1263_p12, %p1262_p11 }
  0x1b   : > { %p1265_p0 = pneg %p1264_p13 }
  0x1d   : > { %p1270_p5 = pnand %p1268_p3, %p1265_p0 }
  0x1f   : > { %1273 = shalt.err (!%p1270_p5)
}
  0x20   : > { %s1274_s24 = scalar_lea.vmem %s215_s7, 2048  ;;  %p1282_p1 = scmp.lt.s32.totalorder %s215_s7, %s215_s7 }
  0x21   : > { %p1275_p7 = scmp.ne.s32.totalorder %s215_s7, %s1274_s24  ;;  %p1283_p4 = scmp.lt.s32.totalorder %s1274_s24, %s1274_s24 }
  0x23   : > { %p1277_p9 = pnand %p1275_p7, %p1263_p12  ;;  %p1284_p8 = por %p1283_p4, %p1282_p1 }
  0x25   : > { %p1278_p6 = pneg %p1277_p9 }
  0x27   : > { %p1285_p2 = pnand %p1284_p8, %p1278_p6 }
  0x29   : > { %1288 = shalt.err (!%p1285_p2)
}
  0x2a   : > { %s1437_s25 = smov 64   ;;  %s1438_s6 = smov 4  }
  0x2b   : > { %1138 = dma.hbm_to_vmem [thread:$0]  (!%p1538_p10), %s1811_s3, 2048, %s215_s7, [#allocation7], %s1437_s25, %s1437_s25, %s1438_s6  }
  0x2c   : > { %s1289_s14 = scalar_lea.hbm %s1812_s4, 1024 }
  0x2d   : > { %p1290_p11 = scmp.ne.s32.totalorder %s1812_s4, %s1289_s14  ;;  %p1296_p4 = scmp.lt.u32.totalorder %s1289_s14, %s1812_s4 }
  0x2f   : > { %p1292_p1 = pnand %p1290_p11, %p1263_p12 }
  0x31   : > { %p1293_p2 = pneg %p1292_p1 }
  0x33   : > { %p1298_p6 = pnand %p1296_p4, %p1293_p2 }
  0x35   : > { %1301 = shalt.err (!%p1298_p6)
}
  0x36   : > { %s1302_s7 = scalar_lea.vmem %s1542_s10, 1024  ;;  %p1310_p3 = scmp.lt.s32.totalorder %s1542_s10, %s1542_s10 }
  0x37   : > { %p1303_p8 = scmp.ne.s32.totalorder %s1542_s10, %s1302_s7  ;;  %p1311_p5 = scmp.lt.s32.totalorder %s1302_s7, %s1302_s7 }
  0x39   : > { %p1305_p13 = pnand %p1303_p8, %p1263_p12  ;;  %p1312_p7 = por %p1311_p5, %p1310_p3 }
  0x3b   : > { %p1306_p0 = pneg %p1305_p13 }
  0x3d   : > { %p1313_p9 = pnand %p1312_p7, %p1306_p0 }
  0x3f   : > { %1316 = shalt.err (!%p1313_p9)
}
  0x40   : > { %1141 = dma.hbm_to_vmem [thread:$0]  (!%p1538_p10), %s1812_s4, 1024, %s1542_s10, [#allocation7], %s1437_s25, %s1437_s25, %s1438_s6  }
  0x41   : > { %s34_s12 = sadd.s32 1, %s1429_s22  ;;  %s41_s13 = sadd.s32 1, %s1421_s20 }
  0x42   : > { %p36_p12 = scmp.ge.s32.totalorder %s34_s12, 4  ;;  %p48_p11 = scmp.ne.s32.totalorder %s1421_s20, %s1417_s19 }
  0x43   : > { %p49_p1 = scmp.eq.s32.totalorder %s1433_s23, 0  ;;  %p1152_p2 = scmp.lt.s32.totalorder %s1433_s23, 4 }
  0x44   : > { %s1837_s12 = smov (%p36_p12, %s34_s12), 0  ;;  %p1824_p6 = scmp.ne.s32.totalorder %s1819_s27, 0 }
  0x45   : > { %p50_p4 = por %p49_p1, %p48_p11  ;;  %s38_s14 = ssub.s32 %s1429_s22, %s1837_s12 }
  0x46   : > { %p1601_p8 = por %p1824_p6, %p48_p11  ;;  %s241_s15 = sand.u32 1, %s1421_s20  }
  0x47   : > { %p39_p13 = scmp.eq.s32.totalorder %s38_s14, 0  ;;  %s992_s10 = sshll.u32 %s241_s15, 5 }
  0x48   : > { %s1047_s25 = sshll.u32 %s1429_s22, 9  ;;  %s245_s27 = scalar_lea.vmem [#allocation3], %s992_s10 }
  0x49   : > { %s1610_s6 = scalar_select %p39_p13, %s1421_s20, %s41_s13  }
  0x4a   : > { %s1615_s24 = scalar_lea.hbm %s1808_s0, %s1047_s25  ;;  %s252_s7 = sshll.u32 %s245_s27, 4  ;;  %s1623_s7 = int_to_ptr.vmem [resolvable:$true] %s252_s7 }
  0x4b   : > { %p1619_p10 = pnand %p1152_p2, %p50_p4  ;;  %s1625_s11 = scalar_lea.sflag [#allocation4], %s241_s15 }
  0x4c   : > { %s1317_s13 = scalar_lea.hbm %s1615_s24, 512  ;;  %s1322_s25 = scalar_lea.hbm %s1808_s0, 2048 }
  0x4d   : > { %p1318_p0 = scmp.ne.s32.totalorder %s1615_s24, %s1317_s13  ;;  %p1319_p3 = pneg %p1619_p10 }
  0x4e   : > { %p1323_p9 = scmp.lt.u32.totalorder %s1615_s24, %s1808_s0  ;;  %p1324_p12 = scmp.lt.u32.totalorder %s1322_s25, %s1317_s13 }
  0x4f   : > { %p1320_p5 = pnand %p1319_p3, %p1318_p0  ;;  %p1326_p1 = scmp.lt.u32.totalorder %s1317_s13, %s1615_s24 }
  0x50   : > { %p1325_p11 = por %p1324_p12, %p1323_p9 }
  0x51   : > { %p1321_p7 = pneg %p1320_p5 }
  0x52   : > { %p1327_p2 = por %p1326_p1, %p1325_p11 }
  0x54   : > { %p1328_p4 = pnand %p1327_p2, %p1321_p7 }
  0x56   : > { %1331 = shalt.err (!%p1328_p4)
}
  0x57   : > { %s1332_s15 = scalar_lea.vmem %s1623_s7, 512  ;;  %s1439_s27 = smov [#allocation3]  }
  0x58   : > { %p1333_p6 = scmp.ne.s32.totalorder %s1623_s7, %s1332_s15  ;;  %s1337_s14 = sshll.u32 %s1439_s27, 4  ;;  %s1338_s14 = int_to_ptr.vmem [resolvable:$false] %s1337_s14 }
  0x59   : > { %s1339_s10 = scalar_lea.vmem %s1338_s14, 1024  ;;  %p1340_p5 = scmp.lt.s32.totalorder %s1623_s7, %s1338_s14 }
  0x5a   : > { %p1335_p13 = pnand %p1333_p6, %p1319_p3  ;;  %p1341_p9 = scmp.lt.s32.totalorder %s1339_s10, %s1332_s15 }
  0x5c   : > { %p1336_p0 = pneg %p1335_p13  ;;  %p1342_p12 = por %p1341_p9, %p1340_p5 }
  0x5e   : > { %p1343_p11 = pnand %p1342_p12, %p1336_p0 }
  0x60   : > { %1346 = shalt.err (!%p1343_p11)
}
  0x61   : > { %s1440_s13 = smov 128   ;;  %s1441_s25 = smov 8  }
  0x62   : > { %1145 = dma.hbm_to_vmem [thread:$0]  (!%p1619_p10), %s1615_s24, 512, %s1623_s7, %s1625_s11, %s1440_s13, %s1440_s13, %s1441_s25  }
  0x63   : > { %p1827_p3 = scmp.ne.s32.totalorder %s1822_s30, 0 }
  0x64   : > { %s1656_s16 = sand.u32 (!%p1827_p3), 1, %s1417_s19   ;;  %p1828_p7 = scmp.ne.s32.totalorder (!%p1827_p3), %s1820_s28, 0 }
  0x65   : > { %273 = sbr.rel (%p1827_p3) target bundleno = 607 (0x25f), region = 40  ;;  %s996_s17 = sshll.u32 (!%p1827_p3), %s1656_s16, 5 }
  0x66   : > { %s276_s15 = scalar_lea.sflag (!%p1827_p3), [#allocation4], %s1656_s16  ;;  %s1662_s27 = scalar_lea.vmem (!%p1827_p3), [#allocation3], %s996_s17 }
  0x6c   : > { %1400 = dma.done.wait (%p1828_p7), %s276_s15, 512  }
  0x6d   : > { %1402 = vsyncadd (%p1828_p7), %s276_s15, 4294966784  ;;  %p1829_p10 = scmp.ne.s32.totalorder %s1818_s26, 0 }
  0x6f   : > { %1404 = dma.done.wait (%p1829_p10), [#allocation7], 3072  }
  0x70   : > { %1406 = vsyncadd (%p1829_p10), [#allocation7], 4294964224  ;;  %v1442_v0 = vmov 0   ;;  %v1213_v1 = vld [vmem:[%s1810_s2 + $0x4] ss:$8 sps:$4 sm:$0xff]   ;;  %s1000_s14 = sshll.u32 %s1425_s21, 2 }
  0x71   : > { %609 = vmatprep.mubr.bf16.mxu1 %v1442_v0  ;;  %v1215_v2 = vld [vmem:[%s1810_s2] ss:$8 sps:$4 sm:$0xff]   ;;  %577 = vmatprep.subr.bf16.mxu1 %v1213_v1  ;;  %v1216_v3 = vld [vmem:[%s1810_s2 + $0x14] ss:$8 sps:$4 sm:$0xff]   ;;  %v1218_v4 = vld [vmem:[%s1810_s2 + $0x10] ss:$8 sps:$4 sm:$0xff]  }
  0x72   : > { %578 = vmatpush1.bf16.msra.mxu1 %v1215_v2  ;;  %v1219_v5 = vld [vmem:[%s1810_s2 + $0x24] ss:$8 sps:$4 sm:$0xff]   ;;  %p326_p1 = scmp.lt.s32.totalorder %s1000_s14, 15  ;;  %v1221_v6 = vld [vmem:[%s1810_s2 + $0x20] ss:$8 sps:$4 sm:$0xff]   ;;  %v1239_v14 = vld [vmem:[#allocation8 + $0x10] sm:$0xff]  }
  0x73   : > { %579 = vmatprep.subr.bf16.mxu1 %v1216_v3  ;;  %v1222_v7 = vld [vmem:[%s1810_s2 + $0x34] ss:$8 sps:$4 sm:$0xff]   ;;  %v1224_v8 = vld [vmem:[%s1810_s2 + $0x30] ss:$8 sps:$4 sm:$0xff]   ;;  %v1225_v9 = vld [vmem:[%s1810_s2 + $0x44] ss:$8 sps:$4 sm:$0xff]  }
  0x74   : > { %s1839_s14 = smov (!%p326_p1, %s1000_s14), 15  ;;  %v1237_v10 = vld [vmem:[#allocation8] sm:$0xff]   ;;  %v1238_v11 = vld [vmem:[#allocation8 + $0x8] sm:$0xff]   ;;  %v1228_v13 = vld [vmem:[%s1810_s2 + $0x54] ss:$8 sps:$4 sm:$0xff]   ;;  %s1048_s9 = sshll.u32 %s1425_s21, 9 }
  0x75   : > { %s1001_s10 = sshll.u32 %s1839_s14, 3  ;;  %v1227_v12 = vld [vmem:[%s1810_s2 + $0x40] ss:$8 sps:$4 sm:$0xff]   ;;  %1087 = vmatprep.subr.bf16.mxu0 %v1237_v10  ;;  %v1230_v15 = vld [vmem:[%s1810_s2 + $0x50] ss:$8 sps:$4 sm:$0xff]   ;;  %s843_s11 = scalar_lea.sflag [#allocation5], %s1656_s16 }
  0x76   : > { %580 = vmatpush1.bf16.msra.mxu1 %v1218_v4  ;;  %1088 = vmatpush3.bf16.msra.mxu0 %v1237_v10  ;;  %s1713_s28 = scalar_lea.vmem %s1809_s1, %s1001_s10  ;;  %v1231_v16 = vld [vmem:[%s1810_s2 + $0x64] ss:$8 sps:$4 sm:$0xff]   ;;  %v1240_v17 = vld [vmem:[#allocation8 + $0x18] sm:$0xff]   ;;  %v1233_v21 = vld [vmem:[%s1810_s2 + $0x60] ss:$8 sps:$4 sm:$0xff]   ;;  %s1443_s26 = smov [#allocation9]  }
  0x77   : > { %581 = vmatprep.subr.bf16.mxu1 %v1219_v5  ;;  %1089 = vmatprep.subr.bf16.mxu0 %v1238_v11  ;;  %v344_v18 = vld [vmem:[%s1713_s28] sm:$0xff]  ;;  %v345_v19 = vld [vmem:[%s1713_s28 + $0x8] sm:$0xff]  ;;  %v1234_v22 = vld [vmem:[%s1810_s2 + $0x74] ss:$8 sps:$4 sm:$0xff]   ;;  %s1351_s13 = sshll.u32 %s1443_s26, 4  ;;  %s1352_s13 = int_to_ptr.vmem [resolvable:$false] %s1351_s13 }
  0x78   : > { %v348_v20 = vpack.c.bf16 %v345_v19, %v344_v18  ;;  %v1241_v23 = vld [vmem:[#allocation8 + $0x20] sm:$0xff]   ;;  %v1236_v24 = vld [vmem:[%s1810_s2 + $0x70] ss:$8 sps:$4 sm:$0xff]   ;;  %v1733_v26 = vld [vmem:[%s1662_s27 + $0x8] sm:$0xff]  ;;  %s1353_s25 = scalar_lea.vmem %s1352_s13, 1024 }
  0x79   : > { %v1730_v25 = vld [vmem:[%s1662_s27] sm:$0xff]  ;;  %v1242_v27 = vld [vmem:[#allocation8 + $0x28] sm:$0xff]   ;;  %v1243_v30 = vld [vmem:[#allocation8 + $0x30] sm:$0xff]  }
  0x7a   : > { %582 = vmatpush1.bf16.msra.mxu1 %v1221_v6  ;;  %1090 = vmatpush3.bf16.msra.mxu0 %v1238_v11  ;;  %v479_v28 = vpack.c.bf16 %v1733_v26, %v1730_v25  ;;  %v1245_v29 = vld [vmem:[#allocation6 + $0x40] sm:$0xff]   ;;  %v1738_v32 = vld [vmem:[%s1662_s27 + $0x10] sm:$0xff]  ;;  %v1741_v33 = vld [vmem:[%s1662_s27 + $0x18] sm:$0xff]  ;;  %s323_s27 = scalar_lea.vmem [#allocation9], %s996_s17 }
  0x7b   : > { %583 = vmatprep.subr.bf16.mxu1 %v1222_v7  ;;  %1091 = vmatprep.subr.bf16.mxu0 %v1239_v14  ;;  %v1246_v31 = vld [vmem:[#allocation6] sm:$0xff]   ;;  %v1247_v34 = vld [vmem:[#allocation6 + $0x48] sm:$0xff]   ;;  %v1244_v35 = vld [vmem:[#allocation8 + $0x38] sm:$0xff]   ;;  %v480_v36 = vpack.c.bf16 %v1741_v33, %v1738_v32  ;;  %s856_s7 = sshll.u32 %s323_s27, 4  ;;  %s1755_s7 = int_to_ptr.vmem [resolvable:$true] %s856_s7 }
  0x7c   : > { %1103 = vmatprep.mubr.bf16.mxu0 %v348_v20  ;;  %v1248_v37 = vld [vmem:[#allocation6 + $0x8] sm:$0xff]   ;;  %v346_v38 = vld [vmem:[%s1713_s28 + $0x10] sm:$0xff]  ;;  %v347_v39 = vld [vmem:[%s1713_s28 + $0x18] sm:$0xff]  ;;  %s1760_s28 = scalar_lea.hbm %s1813_s5, %s1048_s9  ;;  %s1347_s21 = scalar_lea.vmem %s1755_s7, 512 }
  0x7d   : > { %v1249_v40 = vld [vmem:[#allocation6 + $0x50] sm:$0xff]   ;;  %v349_v41 = vpack.c.bf16 %v347_v39, %v346_v38  ;;  %v1251_v43 = vld [vmem:[#allocation6 + $0x58] sm:$0xff]   ;;  %v1253_v45 = vld [vmem:[#allocation6 + $0x60] sm:$0xff]   ;;  %p1348_p2 = scmp.ne.s32.totalorder %s1755_s7, %s1347_s21  ;;  %p1354_p13 = scmp.lt.s32.totalorder %s1755_s7, %s1352_s13 }
  0x7e   : > { %584 = vmatpush1.bf16.msra.mxu1 %v1224_v8  ;;  %1092 = vmatpush3.bf16.msra.mxu0 %v1239_v14  ;;  %v1250_v42 = vld [vmem:[#allocation6 + $0x10] sm:$0xff]   ;;  %v1252_v44 = vld [vmem:[#allocation6 + $0x18] sm:$0xff]   ;;  %v1254_v46 = vld [vmem:[#allocation6 + $0x20] sm:$0xff]   ;;  %p1355_p0 = scmp.lt.s32.totalorder %s1353_s25, %s1347_s21 }
  0x7f   : > { %585 = vmatprep.subr.bf16.mxu1 %v1225_v9  ;;  %1093 = vmatprep.subr.bf16.mxu0 %v1240_v17  ;;  %v1255_v47 = vld [vmem:[#allocation6 + $0x68] sm:$0xff]   ;;  %v1257_v49 = vld [vmem:[#allocation6 + $0x70] sm:$0xff]   ;;  %v1259_v51 = vld [vmem:[#allocation6 + $0x78] sm:$0xff]   ;;  %p1349_p4 = pnand %p1348_p2, %p1601_p8 }
  0x80   : > { %v1256_v48 = vld [vmem:[#allocation6 + $0x28] sm:$0xff]   ;;  %v1258_v50 = vld [vmem:[#allocation6 + $0x30] sm:$0xff]   ;;  %v1260_v52 = vld [vmem:[#allocation6 + $0x38] sm:$0xff]   ;;  %p1356_p5 = por %p1355_p0, %p1354_p13 }
  0x81   : > { %p1350_p6 = pneg %p1349_p4 }
  0x82   : > { %586 = vmatpush1.bf16.msra.mxu1 %v1227_v12  ;;  %1094 = vmatpush3.bf16.msra.mxu0 %v1240_v17 }
  0x83   : > { %587 = vmatprep.subr.bf16.mxu1 %v1228_v13  ;;  %1095 = vmatprep.subr.bf16.mxu0 %v1241_v23  ;;  %p1357_p9 = pnand %p1356_p5, %p1350_p6 }
  0x86   : > { %588 = vmatpush1.bf16.msra.mxu1 %v1230_v15  ;;  %1096 = vmatpush3.bf16.msra.mxu0 %v1241_v23 }
  0x87   : > { %589 = vmatprep.subr.bf16.mxu1 %v1231_v16  ;;  %1097 = vmatprep.subr.bf16.mxu0 %v1242_v27 }
  0x8a   : > { %590 = vmatpush1.bf16.msra.mxu1 %v1233_v21  ;;  %1098 = vmatpush3.bf16.msra.mxu0 %v1242_v27 }
  0x8b   : > { %591 = vmatprep.subr.bf16.mxu1 %v1234_v22  ;;  %1099 = vmatprep.subr.bf16.mxu0 %v1243_v30 }
  0x8e   : > { %592 = vmatpush1.bf16.msra.mxu1 %v1236_v24  ;;  %1100 = vmatpush3.bf16.msra.mxu0 %v1243_v30 }
  0x8f   : > { %1107 = vmatprep.subr.bf16.mxu1 %v1245_v29  ;;  %1101 = vmatprep.subr.bf16.mxu0 %v1244_v35 }
  0x91   : > { %610 = vmatmul.mubr.bf16.vlgmr.msra.gmra.mrb[0].mxu1 %v479_v28 }
  0x92   : > { %619 = vmatprep.mubr.bf16.mxu1 %v1442_v0  ;;  %1115 = vmatpush3.bf16.msra.mxu1 %v1246_v31 }
  0x93   : > { %1108 = vmatprep.subr.bf16.mxu1 %v1247_v34  ;;  %1102 = vmatpush3.bf16.msra.mxu0 %v1244_v35 }
  0x94   : > { %1059 = vmatprep.subr.bf16.mxu0 %v1245_v29 }
  0x96   : > { %1116 = vmatpush3.bf16.msra.mxu1 %v1248_v37  ;;  %1104 = vmatmul.mubr.bf16.vlgmr.msra.gmra.mrb[0].mxu0 %v349_v41 }
  0x97   : > { %1109 = vmatprep.subr.bf16.mxu1 %v1249_v40  ;;  %1060 = vmatpush3.bf16.msra.mxu0 %v1246_v31 }
  0x98   : > { %1061 = vmatprep.subr.bf16.mxu0 %v1247_v34 }
  0x99   : > { %620 = vmatmul.mubr.bf16.gmra.mrb[4].mxu1 %v480_v36 }
  0x9a   : > { %1117 = vmatpush3.bf16.msra.mxu1 %v1250_v42 }
  0x9b   : > { %1110 = vmatprep.subr.bf16.mxu1 %v1251_v43  ;;  %1062 = vmatpush3.bf16.msra.mxu0 %v1248_v37 }
  0x9c   : > { %1063 = vmatprep.subr.bf16.mxu0 %v1249_v40 }
  0x9e   : > { %1118 = vmatpush3.bf16.msra.mxu1 %v1252_v44 }
  0x9f   : > { %1111 = vmatprep.subr.bf16.mxu1 %v1253_v45  ;;  %1064 = vmatpush3.bf16.msra.mxu0 %v1250_v42 }
  0xa0   : > { %1065 = vmatprep.subr.bf16.mxu0 %v1251_v43 }
  0xa2   : > { %1119 = vmatpush3.bf16.msra.mxu1 %v1254_v46 }
  0xa3   : > { %1112 = vmatprep.subr.bf16.mxu1 %v1255_v47  ;;  %1066 = vmatpush3.bf16.msra.mxu0 %v1252_v44 }
  0xa4   : > { %1067 = vmatprep.subr.bf16.mxu0 %v1253_v45 }
  0xa6   : > { %1120 = vmatpush3.bf16.msra.mxu1 %v1256_v48 }
  0xa7   : > { %1068 = vmatpush3.bf16.msra.mxu0 %v1254_v46  ;;  %1113 = vmatprep.subr.bf16.mxu1 %v1257_v49 }
  0xa8   : > { %1069 = vmatprep.subr.bf16.mxu0 %v1255_v47 }
  0xaa   : > { %1121 = vmatpush3.bf16.msra.mxu1 %v1258_v50 }
  0xab   : > { %1070 = vmatpush3.bf16.msra.mxu0 %v1256_v48  ;;  %1114 = vmatprep.subr.bf16.mxu1 %v1259_v51 }
  0xac   : > { %1071 = vmatprep.subr.bf16.mxu0 %v1257_v49 }
  0xae   : > { %1122 = vmatpush3.bf16.msra.mxu1 %v1260_v52 }
  0xaf   : > { %1072 = vmatpush3.bf16.msra.mxu0 %v1258_v50 }
  0xb0   : > { %1073 = vmatprep.subr.bf16.mxu0 %v1259_v51 }
  0xb3   : > { %1074 = vmatpush3.bf16.msra.mxu0 %v1260_v52 }
 0x164   : > { %v611_v53 = vpop.f32.mrb[0].mxu1 }
 0x165   : > { %v613_v54 = vpop.f32.mrb[1].mxu1  ;;  %v630_v56 = vmax.f32 %v611_v53, 0.0 }
 0x166   : > { %v615_v55 = vpop.f32.mrb[2].mxu1  ;;  %v631_v59 = vmax.f32 %v613_v54, 0.0 }
 0x167   : > { %v632_v57 = vmax.f32 %v615_v55, 0.0  ;;  %v617_v58 = vpop.f32.mrb[3].mxu1 }
 0x168   : > { %v633_v60 = vmax.f32 %v617_v58, 0.0 }
 0x169   : > { %v642_v61 = vpack.c.bf16 %v632_v57, %v630_v56  ;;  %v1105_v7 = vpop.f32.mrb[0].mxu0 }
 0x16a   : > { %v643_v62 = vpack.c.bf16 %v633_v60, %v631_v59  ;;  %v448_v9 = vpop.f32.mrb[1].mxu0  ;;  %v469_v27 = vadd.f32 %v1105_v7, %v1738_v32 }
 0x16b   : > { %v1106_v11 = vpop.f32.mrb[2].mxu0  ;;  %v467_v15 = vadd.f32 %v1730_v25, %v448_v9 }
 0x16c   : > { %v621_v63 = vpop.f32.mrb[4].mxu1  ;;  %806 = vmatprep.mubr.bf16.mxu0 %v643_v62  ;;  %v451_v12 = vpop.f32.mrb[3].mxu0 }
 0x16d   : > { %v623_v0 = vpop.f32.mrb[5].mxu1  ;;  %807 = vmatmul.mubr.bf16.vlgmr.msra.gmra.mrb[4].mxu0 %v642_v61  ;;  %v634_v2 = vmax.f32 %v621_v63, 0.0  ;;  %v468_v19 = vadd.f32 %v1733_v26, %v451_v12  ;;  %v470_v26 = vadd.f32 %v1106_v11, %v1741_v33 }
 0x16e   : > { %v625_v1 = vpop.f32.mrb[6].mxu1  ;;  %v635_v5 = vmax.f32 %v623_v0, 0.0 }
 0x16f   : > { %v636_v3 = vmax.f32 %v625_v1, 0.0  ;;  %v627_v4 = vpop.f32.mrb[7].mxu1 }
 0x170   : > { %v637_v6 = vmax.f32 %v627_v4, 0.0 }
 0x171   : > { %v644_v8 = vpack.c.bf16 %v636_v3, %v634_v2 }
 0x172   : > { %v645_v10 = vpack.c.bf16 %v637_v6, %v635_v5 }
 0x174   : > { %814 = vmatprep.mubr.bf16.mxu1 %v645_v10 }
 0x175   : > { %815 = vmatmul.mubr.bf16.vlgmr.msra.gmra.mrb[8].mxu1 %v644_v8 }
 0x240   : > { %v1075_v13 = vpop.f32.mrb[4].mxu0 }
 0x241   : > { %v1076_v14 = vpop.f32.mrb[5].mxu0 }
 0x242   : > { %v1077_v16 = vadd.f32 %v1076_v14, %v1075_v13  ;;  %v1078_v17 = vpop.f32.mrb[6].mxu0 }
 0x243   : > { %v1079_v18 = vpop.f32.mrb[7].mxu0 }
 0x244   : > { %v823_v20 = vadd.f32 %v1077_v16, %v467_v15  ;;  %v1080_v21 = vadd.f32 %v1079_v18, %v1078_v17 }
 0x246   : > { %838 = vst [vmem:[%s323_s27] sm:$0xff] %v823_v20  ;;  %v824_v22 = vadd.f32 %v1080_v21, %v468_v19 }
 0x248   : > { %839 = vst [vmem:[%s323_s27 + $0x8] sm:$0xff] %v824_v22  ;;  %v1081_v23 = vpop.f32.mrb[8].mxu1 }
 0x249   : > { %v1082_v24 = vpop.f32.mrb[9].mxu1 }
 0x24a   : > { %v1083_v25 = vadd.f32 %v1082_v24, %v1081_v23  ;;  %v1084_v28 = vpop.f32.mrb[10].mxu1 }
 0x24b   : > { %v1085_v29 = vpop.f32.mrb[11].mxu1 }
 0x24c   : > { %v825_v30 = vadd.f32 %v1083_v25, %v469_v27  ;;  %v1086_v31 = vadd.f32 %v1085_v29, %v1084_v28 }
 0x24e   : > { %840 = vst [vmem:[%s323_s27 + $0x10] sm:$0xff] %v825_v30  ;;  %v826_v32 = vadd.f32 %v1086_v31, %v470_v26 }
 0x250   : > { %841 = vst [vmem:[%s323_s27 + $0x18] sm:$0xff] %v826_v32 }
 0x251   : > { %1360 = shalt.err (!%p1357_p9)
}
 0x252   : > { %s1361_s10 = scalar_lea.hbm %s1760_s28, 512  ;;  %s1365_s24 = scalar_lea.hbm %s1813_s5, 2048 }
 0x253   : > { %p1362_p12 = scmp.ne.s32.totalorder %s1760_s28, %s1361_s10  ;;  %p1366_p7 = scmp.lt.u32.totalorder %s1760_s28, %s1813_s5 }
 0x254   : > { %p1367_p10 = scmp.lt.u32.totalorder %s1365_s24, %s1361_s10  ;;  %p1369_p2 = scmp.lt.u32.totalorder %s1361_s10, %s1760_s28 }
 0x255   : > { %p1363_p11 = pnand %p1362_p12, %p1601_p8 }
 0x256   : > { %p1368_p1 = por %p1367_p10, %p1366_p7 }
 0x257   : > { %p1364_p3 = pneg %p1363_p11 }
 0x258   : > { %p1370_p4 = por %p1369_p2, %p1368_p1 }
 0x25a   : > { %p1371_p6 = pnand %p1370_p4, %p1364_p3 }
 0x25c   : > { %1374 = shalt.err (!%p1371_p6)
}
 0x25d   : > { %s1444_s17 = smov 128   ;;  %s1445_s14 = smov 8  }
 0x25e   : > { %1133 = dma.vmem_to_hbm [thread:$0]  (%p1601_p8), %s1755_s7, 512, %s1760_s28, %s843_s11, %s1444_s17, %s1444_s17, %s1445_s14  }
 0x25f PF: > { %p1155_p13 = scmp.ge.s32.totalorder %s1433_s23, 2  ;;  %s871_s21 = sand.u32 1, %s1413_s18  }
 0x260   : > { %p1830_p0 = scmp.ne.s32.totalorder %s1821_s29, 0  ;;  %s872_s26 = scalar_lea.sflag [#allocation5], %s871_s21 }
 0x262   : > { %p1147_p5 = pnand %p1155_p13, %p1830_p0 }
 0x264   : > { %1408 = dma.done.wait (!%p1147_p5), %s872_s26, 512  }
 0x265   : > { %1410 = vsyncadd (!%p1147_p5), %s872_s26, 4294966784  ;;  %s22_s23 = sadd.s32 1, %s1433_s23   ;;  %s1831_s18 = smov %s1417_s19 }
 0x266   : > { %p19_p9 = scmp.ge.s32.totalorder %s22_s23, 6   ;;  %s1832_s19 = smov %s1421_s20 }
 0x267   : > { %s1833_s20 = smov %s1610_s6  ;;  %s1834_s21 = smov %s1429_s22 }
 0x268   : > { %s1835_s22 = smov %s1837_s12  ;;  %21 = sbr.rel (!%p19_p9) target bundleno = 7 (0x7), region = 108 }
 0x26f   :  { %877 = vsyncpa [#allocation4], 1 }
 0x270   :  { %879 = vsyncpa [#allocation4 + $0x1], 1 }
 0x271   :  { %880 = vsyncpa [#allocation7], 1 }
 0x272   :  { %881 = vsyncpa [#allocation5], 1 }
 0x273   :  { %883 = vsyncpa [#allocation5 + $0x1], 1 }

</bundles_post_ra>
